<compile_context>
chip_gen: v7x
topology: tpu7x:2x2x1
jax: 0.10.0
libtpu: 0.0.40
codegen_flags: <defaults>
</compile_context>

<pallas_src>
import jax
import jax.numpy as jnp
from jax import lax
from jax.experimental import pallas as pl
from jax.experimental.pallas import tpu as pltpu

_LANE = 128
# The (tb, 13) f32 input block lane-pads 13->128 in VMEM (~512*tb B/buffer),
# so large tiles overshoot the 32 MiB default scoped limit; 48 MiB still
# leaves headroom under v7x's 64 MiB physical VMEM (and is trivial on
# v5e/v6e's 128 MiB).
_VMEM_LIMIT_BYTES = 48 * 1024 * 1024


def _round_up(n, m):
    return ((n + m - 1) // m) * m


def _regressor_kernel(x_ref, w1_ref, b1_ref, w2_ref, b2_ref, w3_ref, b3_ref,
                      o_ref):
    # x_ref: [tb, 13] batch-major tile straight from HBM (no wrapper transpose).
    x = x_ref[...]

    # fc1 + ReLU: w1 [50,13] . x [tb,13] (contract both last dims) -> [50, tb]
    # The operand "transpose" rides the MXU/XLU instead of an HBM round trip.
    h1 = lax.dot_general(w1_ref[...], x, (((1,), (1,)), ((), ())),
                         preferred_element_type=jnp.float32)
    h1 = jnp.maximum(h1 + b1_ref[...], 0.0)

    # fc2 + ReLU (+ Dropout(0.2) == identity in eval mode)      -> [30, tb]
    h2 = jnp.dot(w2_ref[...], h1, preferred_element_type=jnp.float32)
    h2 = jnp.maximum(h2 + b2_ref[...], 0.0)

    # fc3 + ReLU                                                -> [1, tb]
    h3 = jnp.dot(w3_ref[...], h2, preferred_element_type=jnp.float32)
    h3 = jnp.maximum(h3 + b3_ref[...], 0.0)

    o_ref[...] = h3.astype(o_ref.dtype)


def _run_pallas(x_slab, params, tb, n_blocks):
    """Run the kernel over the first n_blocks*tb rows of x_slab ([R, 13])."""
    n_rows = n_blocks * tb
    w1, b1 = params["w1"], params["b1"]
    w2, b2 = params["w2"], params["b2"]
    w3, b3 = params["w3"], params["b3"]

    # Parameters: full-array blocks with a constant block index -> DMA'd once,
    # VMEM-resident across every grid step (~10 KB total).
    def resident(a):
        return pl.BlockSpec(a.shape, lambda i: (0, 0))

    out = pl.pallas_call(
        _regressor_kernel,
        out_shape=jax.ShapeDtypeStruct((1, n_rows), jnp.float32),
        grid=(n_blocks,),
        in_specs=[
            # Streamed batch tiles, auto double-buffered by Pallas.
            # (If DMA is still exposed at large tb, sweep
            #  pipeline_mode=pl.Buffered(3) here.)
            pl.BlockSpec((tb, 13), lambda i: (i, 0)),
            resident(w1), resident(b1),
            resident(w2), resident(b2),
            resident(w3), resident(b3),
        ],
        out_specs=pl.BlockSpec((1, tb), lambda i: (0, i)),
        compiler_params=pltpu.CompilerParams(
            # Batch tiles are independent -> megacore split on v7x.
            dimension_semantics=("parallel",),
            vmem_limit_bytes=_VMEM_LIMIT_BYTES,
        ),
    )(x_slab, w1, b1, w2, b2, w3, b3)

    # (1, n_rows) -> (n_rows, 1): pure reshape, no data movement.
    return jnp.reshape(out, (n_rows, 1))


def regressor_forward(x, params, *, block_b=16384, min_pallas_batch=1024):
    """Forward pass of the Regressor MLP.

    x: [B, 13] float32 (batch-major, PyTorch convention).
    params: PyTorch-layout weights (w: [out, in], b: [out, 1]).
    block_b: batch rows per grid tile (rounded to a multiple of 128). Keep
             <= ~16384 (VMEM lane-pad of the (tb,13) block) unless
             _VMEM_LIMIT_BYTES is raised.
    min_pallas_batch: below this batch size, use the fused XLA path instead
             (pallas_call fixed cost exceeds the whole matmul chain there).
    """
    B, F = x.shape
    assert F == 13, f"expected 13 input features, got {F}"

    if B < min_pallas_batch:
        return reference_forward(x, params)

    # Batch tile: multiple of 128 lanes; cap at ~B/2 so the grid has >= 2
    # steps whenever possible (lets ("parallel",) use both v7x TensorCores).
    two_way_cap = max(_LANE, (B // 2) // _LANE * _LANE)
    tb = max(_LANE, min(_round_up(block_b, _LANE), two_way_cap))

    n_full = B // tb
    rem = B - n_full * tb

    pieces = []
    if n_full > 0:
        # Bulk: pass x un-copied; the grid simply never visits the ragged tail.
        pieces.append(_run_pallas(x, params, tb, n_full))
    if rem > 0:
        # Ragged tail: one full-array block (block == array dims, so no
        # (8,128)/divisibility constraints and no padding/garbage columns);
        # only the < tb tail rows get sliced.
        pieces.append(_run_pallas(x[n_full * tb:], params, rem, 1))

    return pieces[0] if len(pieces) == 1 else jnp.concatenate(pieces, axis=0)


def init_params(key):
    """Deterministic init matching nn.Linear: weight [out, in], bias [out, 1]."""
    ks = jax.random.split(key, 6)

    def linear(kw, kb, fan_in, fan_out):
        bound = 1.0 / jnp.sqrt(fan_in)
        w = jax.random.uniform(kw, (fan_out, fan_in), jnp.float32,
                               -bound, bound)
        b = jax.random.uniform(kb, (fan_out, 1), jnp.float32, -bound, bound)
        return w, b

    w1, b1 = linear(ks[0], ks[1], 13, 50)
    w2, b2 = linear(ks[2], ks[3], 50, 30)
    w3, b3 = linear(ks[4], ks[5], 30, 1)
    return {"w1": w1, "b1": b1, "w2": w2, "b2": b2, "w3": w3, "b3": b3}


def reference_forward(x, p):
    h1 = jnp.maximum(x @ p["w1"].T + p["b1"].T, 0.0)
    h2 = jnp.maximum(h1 @ p["w2"].T + p["b2"].T, 0.0)   # dropout = identity (eval)
    return jnp.maximum(h2 @ p["w3"].T + p["b3"].T, 0.0)


if __name__ == "__main__":
    key = jax.random.PRNGKey(0)
    k1, k2, k3, kp = jax.random.split(key, 4)
    params = init_params(kp)

    # 1) Tiny batch: single full-array block (exercises the tail kernel path).
    x_small = jax.random.normal(k1, (8, 13), dtype=jnp.float32)
    out_small = jax.block_until_ready(
        regressor_forward(x_small, params, min_pallas_batch=0))
    ref_small = reference_forward(x_small, params)
    assert out_small.shape == (8, 1), out_small.shape
    assert jnp.allclose(out_small, ref_small, atol=1e-4, rtol=1e-4), \
        "mismatch vs reference (small batch)"

    # 2) Multi-tile grid + ragged tail (streamed bulk kernel + tail kernel).
    x_big = jax.random.normal(k2, (389, 13), dtype=jnp.float32)
    out_big = jax.block_until_ready(
        regressor_forward(x_big, params, block_b=128, min_pallas_batch=0))
    ref_big = reference_forward(x_big, params)
    assert out_big.shape == (389, 1), out_big.shape
    assert jnp.allclose(out_big, ref_big, atol=1e-4, rtol=1e-4), \
        "mismatch vs reference (multi-tile batch)"

    # 3) Exactly-divisible batch where the >=2-grid-step (megacore) cap kicks in.
    x_mid = jax.random.normal(k3, (512, 13), dtype=jnp.float32)
    out_mid = jax.block_until_ready(
        regressor_forward(x_mid, params, min_pallas_batch=0))
    ref_mid = reference_forward(x_mid, params)
    assert out_mid.shape == (512, 1), out_mid.shape
    assert jnp.allclose(out_mid, ref_mid, atol=1e-4, rtol=1e-4), \
        "mismatch vs reference (divisible batch)"

    print("KERNEL_OK")
</pallas_src>

<mosaic_0001>
module attributes {stable_mosaic.version = 11 : i64} {
  func.func @_regressor_kernel(%arg0: i32, %arg1: memref<8x13xf32, #tpu.memory_space<vmem>>, %arg2: memref<50x13xf32, #tpu.memory_space<vmem>>, %arg3: memref<50x1xf32, #tpu.memory_space<vmem>>, %arg4: memref<30x50xf32, #tpu.memory_space<vmem>>, %arg5: memref<30x1xf32, #tpu.memory_space<vmem>>, %arg6: memref<1x30xf32, #tpu.memory_space<vmem>>, %arg7: memref<1x1xf32, #tpu.memory_space<vmem>>, %arg8: memref<1x8xf32, #tpu.memory_space<vmem>>) attributes {dimension_semantics = [#tpu.dimension_semantics<parallel>], iteration_bounds = array<i64: 1>, scalar_prefetch = 0 : i64, scratch_operands = 0 : i64, tpu.core_type = #tpu.core_type<tc>, window_params = [{transform_indices = @transform_0, window_bounds = array<i64: 8, 13>}, {pipeline_mode = #tpu.pipeline_mode<synchronous>, transform_indices = @transform_1, window_bounds = array<i64: 50, 13>}, {pipeline_mode = #tpu.pipeline_mode<synchronous>, transform_indices = @transform_2, window_bounds = array<i64: 50, 1>}, {pipeline_mode = #tpu.pipeline_mode<synchronous>, transform_indices = @transform_3, window_bounds = array<i64: 30, 50>}, {pipeline_mode = #tpu.pipeline_mode<synchronous>, transform_indices = @transform_4, window_bounds = array<i64: 30, 1>}, {pipeline_mode = #tpu.pipeline_mode<synchronous>, transform_indices = @transform_5, window_bounds = array<i64: 1, 30>}, {pipeline_mode = #tpu.pipeline_mode<synchronous>, transform_indices = @transform_6, window_bounds = array<i64: 1, 1>}, {transform_indices = @transform_7, window_bounds = array<i64: 1, 8>}]} {
    %c0 = arith.constant 0 : index
    %c0_0 = arith.constant 0 : index
    %0 = vector.load %arg1[%c0, %c0_0] : memref<8x13xf32, #tpu.memory_space<vmem>>, vector<8x13xf32>
    %c0_1 = arith.constant 0 : index
    %c0_2 = arith.constant 0 : index
    %1 = vector.load %arg2[%c0_1, %c0_2] : memref<50x13xf32, #tpu.memory_space<vmem>>, vector<50x13xf32>
    %cst = arith.constant dense<0.000000e+00> : vector<50x8xf32>
    %2 = tpu.matmul %1, %0, %cst {dimension_numbers = #tpu.dot_dimension_numbers<[1], [1], [0], [0], [0, 0, 1, 0], [], []>} : vector<50x13xf32>, vector<8x13xf32>, vector<50x8xf32> -> vector<50x8xf32>
    %c0_3 = arith.constant 0 : index
    %c0_4 = arith.constant 0 : index
    %3 = vector.load %arg3[%c0_3, %c0_4] : memref<50x1xf32, #tpu.memory_space<vmem>>, vector<50x1xf32>
    %4 = vector.broadcast %3 : vector<50x1xf32> to vector<50x8xf32>
    %5 = arith.addf %2, %4 : vector<50x8xf32>
    %cst_5 = arith.constant 0.000000e+00 : f32
    %6 = vector.broadcast %cst_5 : f32 to vector<50x8xf32>
    %7 = arith.maximumf %5, %6 : vector<50x8xf32>
    %c0_6 = arith.constant 0 : index
    %c0_7 = arith.constant 0 : index
    %8 = vector.load %arg4[%c0_6, %c0_7] : memref<30x50xf32, #tpu.memory_space<vmem>>, vector<30x50xf32>
    %cst_8 = arith.constant dense<0.000000e+00> : vector<30x8xf32>
    %9 = tpu.matmul %8, %7, %cst_8 {dimension_numbers = #tpu.dot_dimension_numbers<[1], [0], [0], [1], [0, 0, 1, 1], [], []>} : vector<30x50xf32>, vector<50x8xf32>, vector<30x8xf32> -> vector<30x8xf32>
    %c0_9 = arith.constant 0 : index
    %c0_10 = arith.constant 0 : index
    %10 = vector.load %arg5[%c0_9, %c0_10] : memref<30x1xf32, #tpu.memory_space<vmem>>, vector<30x1xf32>
    %11 = vector.broadcast %10 : vector<30x1xf32> to vector<30x8xf32>
    %12 = arith.addf %9, %11 : vector<30x8xf32>
    %cst_11 = arith.constant 0.000000e+00 : f32
    %13 = vector.broadcast %cst_11 : f32 to vector<30x8xf32>
    %14 = arith.maximumf %12, %13 : vector<30x8xf32>
    %c0_12 = arith.constant 0 : index
    %c0_13 = arith.constant 0 : index
    %15 = vector.load %arg6[%c0_12, %c0_13] : memref<1x30xf32, #tpu.memory_space<vmem>>, vector<1x30xf32>
    %cst_14 = arith.constant dense<0.000000e+00> : vector<1x8xf32>
    %16 = tpu.matmul %15, %14, %cst_14 {dimension_numbers = #tpu.dot_dimension_numbers<[1], [0], [0], [1], [0, 0, 1, 1], [], []>} : vector<1x30xf32>, vector<30x8xf32>, vector<1x8xf32> -> vector<1x8xf32>
    %c0_15 = arith.constant 0 : index
    %c0_16 = arith.constant 0 : index
    %17 = vector.load %arg7[%c0_15, %c0_16] : memref<1x1xf32, #tpu.memory_space<vmem>>, vector<1x1xf32>
    %18 = vector.broadcast %17 : vector<1x1xf32> to vector<1x8xf32>
    %19 = arith.addf %16, %18 : vector<1x8xf32>
    %cst_17 = arith.constant 0.000000e+00 : f32
    %20 = vector.broadcast %cst_17 : f32 to vector<1x8xf32>
    %21 = arith.maximumf %19, %20 : vector<1x8xf32>
    %c0_18 = arith.constant 0 : index
    %c0_19 = arith.constant 0 : index
    %22 = vector.load %arg8[%c0_18, %c0_19] : memref<1x8xf32, #tpu.memory_space<vmem>>, vector<1x8xf32>
    tpu.vector_store %arg8[%c0_18, %c0_19], %21 {strides = array<i32>} : memref<1x8xf32, #tpu.memory_space<vmem>>, vector<1x8xf32>,
    return
  }
  func.func @transform_0(%arg0: i32) -> (i32, i32) {
    %c0_i32 = arith.constant 0 : i32
    %c0_i32_0 = arith.constant 0 : i32
    return %arg0, %c0_i32 : i32, i32
  }
  func.func @transform_1(%arg0: i32) -> (i32, i32) {
    %c0_i32 = arith.constant 0 : i32
    %c0_i32_0 = arith.constant 0 : i32
    %c0_i32_1 = arith.constant 0 : i32
    return %c0_i32, %c0_i32_0 : i32, i32
  }
  func.func @transform_2(%arg0: i32) -> (i32, i32) {
    %c0_i32 = arith.constant 0 : i32
    %c0_i32_0 = arith.constant 0 : i32
    %c0_i32_1 = arith.constant 0 : i32
    return %c0_i32, %c0_i32_0 : i32, i32
  }
  func.func @transform_3(%arg0: i32) -> (i32, i32) {
    %c0_i32 = arith.constant 0 : i32
    %c0_i32_0 = arith.constant 0 : i32
    %c0_i32_1 = arith.constant 0 : i32
    return %c0_i32, %c0_i32_0 : i32, i32
  }
  func.func @transform_4(%arg0: i32) -> (i32, i32) {
    %c0_i32 = arith.constant 0 : i32
    %c0_i32_0 = arith.constant 0 : i32
    %c0_i32_1 = arith.constant 0 : i32
    return %c0_i32, %c0_i32_0 : i32, i32
  }
  func.func @transform_5(%arg0: i32) -> (i32, i32) {
    %c0_i32 = arith.constant 0 : i32
    %c0_i32_0 = arith.constant 0 : i32
    %c0_i32_1 = arith.constant 0 : i32
    return %c0_i32, %c0_i32_0 : i32, i32
  }
  func.func @transform_6(%arg0: i32) -> (i32, i32) {
    %c0_i32 = arith.constant 0 : i32
    %c0_i32_0 = arith.constant 0 : i32
    %c0_i32_1 = arith.constant 0 : i32
    return %c0_i32, %c0_i32_0 : i32, i32
  }
  func.func @transform_7(%arg0: i32) -> (i32, i32) {
    %c0_i32 = arith.constant 0 : i32
    %c0_i32_0 = arith.constant 0 : i32
    return %c0_i32, %arg0 : i32, i32
  }
}

</mosaic_0001>

<bundles_post_ra>
// kernel: tpu_custom_call.1
= control target key start
LH: loop header
LB: loop body
LE: loop exit
PB: predicated region body
PF: predicated region fallthrough
CT: control target
= control target key end

     0   :  { %s757_s0 = inlined_call_operand.vmem [shape: f32[8,13], index: 0, kind: input, shape index: {}]   ;;  %s758_s1 = inlined_call_operand.vmem [shape: f32[50,13], index: 1, kind: input, shape index: {}]   ;;  %s759_s2 = inlined_call_operand.vmem [shape: f32[50,1], index: 2, kind: input, shape index: {}]   ;;  %s760_s3 = inlined_call_operand.vmem [shape: f32[30,50], index: 3, kind: input, shape index: {}]   ;;  %s761_s4 = inlined_call_operand.vmem [shape: f32[30,1], index: 4, kind: input, shape index: {}]   ;;  %s762_s5 = inlined_call_operand.vmem [shape: f32[1,30], index: 5, kind: input, shape index: {}]   ;;  %s763_s6 = inlined_call_operand.<no memory space> [shape: f32[1,1], index: 6, kind: input, shape index: {}]   ;;  %s764_s7 = inlined_call_operand.hbm [shape: f32[1,8], index: 7, kind: output, shape index: {}]  }
   0x1   :  { %v12_v0 = vstv %s763_s6 }
   0x2   :  { %13 = vst [vmem:[#allocation2] sm:$0x1] %v12_v0 }
   0x3   :  { %v29_v1 = vld [vmem:[%s757_s0] sm:$0xff]  ;;  %vm79_vm0 = vcmask 105472   ;;  %v595_v2 = vmov 0.0   ;;  %vm596_vm1 = vmmov 0   ;;  %v597_v4 = vmov 0   ;;  %v39_v6 = vld [vmem:[%s759_s2 + $0x10] sm:$0xff] }
   0x4   :  { %490 = vmatprep.subr.mxu0 %v595_v2  ;;  %492 = vmatprep.mubr.msk.f32.mxu0 %vm596_vm1, %v595_v2  ;;  %v30_v3 = vld [vmem:[%s758_s1] sm:$0xff]  ;;  %v38_v7 = vld [vmem:[%s759_s2 + $0x8] sm:$0xff]  ;;  %v40_v8 = vld [vmem:[%s759_s2 + $0x18] sm:$0xff] }
   0x5   :  { %491 = vmatpush3.xpose.msk.msra.mxu0 %vm79_vm0, %v29_v1  ;;  %569 = vset.pattern.permute.xlu0 %v597_v4  ;;  %v37_v5 = vld [vmem:[%s759_s2] sm:$0xff]  ;;  %v31_v9 = vld [vmem:[%s758_s1 + $0x8] sm:$0xff] }
   0x6   :  { %46 = vperm.xlu0 %569, %v37_v5   ;;  %570 = vset.pattern.permute.xlu1 %v597_v4 }
   0x7   :  { %56 = vperm.xlu1 %570, %v39_v6  }
   0x8   :  { %493 = vmatmul.mubr.msk.f32.vlgmr.msra.gmra.mrb[0].mxu0 %vm79_vm0, %v30_v3 }
   0x9   :  { %495 = vmatprep.mubr.msk.f32.mxu0 %vm596_vm1, %v595_v2 }
   0xa   :  { %14 = vsyncpa [#allocation4], 0  ;;  %51 = vperm.xlu0 %569, %v38_v7   ;;  %v41_v10 = vld [vmem:[%s759_s2 + $0x20] sm:$0xff]  ;;  %v42_v11 = vld [vmem:[%s759_s2 + $0x28] sm:$0xff]  ;;  %vm239_vm2 = vcmask 408576   ;;  %vm252_vm3 = vcmask 1041408  }
   0xb   :  { %61 = vperm.xlu1 %570, %v40_v8   ;;  %v32_v12 = vld [vmem:[%s758_s1 + $0x10] sm:$0xff]  ;;  %v215_v14 = vld [vmem:[%s761_s4] sm:$0xff]  ;;  %v33_v15 = vld [vmem:[%s758_s1 + $0x18] sm:$0xff]  ;;  %v598_v1 = vmov 0.0|0.0   ;;  %vm360_vm4 = vcmask 1045504   ;;  %vm599_vm5 = vmmov 1  }
   0xc   :  { %496 = vmatmul.mubr.msk.f32.gmra.mrb[2].mxu0 %vm79_vm0, %v31_v9  ;;  %v43_v13 = vld [vmem:[%s759_s2 + $0x30] sm:$0x3]  ;;  %v216_v16 = vld [vmem:[%s761_s4 + $0x8] sm:$0xff]  ;;  %v34_v18 = vld [vmem:[%s758_s1 + $0x20] sm:$0xff]  ;;  %vm356_vm7 = vcmask 244736   ;;  %s600_s20 = smov [#allocation3]  }
   0xd   :  { %498 = vmatprep.mubr.msk.f32.mxu0 %vm596_vm1, %v595_v2  ;;  %v217_v17 = vld [vmem:[%s761_s4 + $0x10] sm:$0xff]  ;;  %v218_v19 = vld [vmem:[%s761_s4 + $0x18] sm:$0x3f]  ;;  %v346_v20 = vld [vmem:[#allocation2] sm:$0x1]  ;;  %s443_s21 = sshll.u32 %s600_s20, 4  ;;  %s444_s21 = int_to_ptr.vmem [resolvable:$true] %s443_s21 }
   0xe   :  { %66 = vperm.xlu0 %569, %v41_v10   ;;  %v35_v21 = vld [vmem:[%s758_s1 + $0x28] sm:$0xff]  ;;  %v36_v22 = vld [vmem:[%s758_s1 + $0x30] sm:$0x3]  ;;  %v211_v23 = vld [vmem:[%s760_s3] sm:$0xff]  ;;  %vm435_vm8 = vcmask 57344   ;;  %s571_s22 = scalar_lea.vmem %s444_s21, 16  ;;  %p576_p1 = scmp.lt.s32.totalorder %s444_s21, %s444_s21 }
   0xf   :  { %71 = vperm.xlu1 %570, %v42_v11   ;;  %527 = vmatprep.mubr.msk.f32.mxu1 %vm239_vm2, %v211_v23  ;;  %v212_v62 = vld [vmem:[%s760_s3 + $0x8] sm:$0xff]  ;;  %v213_v63 = vld [vmem:[%s760_s3 + $0x10] sm:$0xff]  ;;  %v214_v0 = vld [vmem:[%s760_s3 + $0x18] sm:$0x3f]  ;;  %p572_p0 = scmp.ne.s32.totalorder %s444_s21, %s571_s22  ;;  %s575_s23 = scalar_lea.vmem %s444_s21, 32 }
  0x10   :  { %499 = vmatmul.mubr.msk.f32.gmra.mrb[4].mxu0 %vm79_vm0, %v32_v12  ;;  %vm561_vm6 = vmpackc.low %vm360_vm4, %vm599_vm5  ;;  %p577_p2 = scmp.lt.s32.totalorder %s575_s23, %s571_s22 }
  0x11   :  { %501 = vmatprep.mubr.msk.f32.mxu0 %vm596_vm1, %v595_v2 }
  0x12   :  { %76 = vperm.xlu0 %569, %v43_v13   ;;  %p578_p3 = por %p577_p2, %p576_p1 }
  0x13   :  { %221 = vperm.xlu1 %570, %v215_v14  }
  0x14   :  { %502 = vmatmul.mubr.msk.f32.gmra.mrb[6].mxu0 %vm79_vm0, %v33_v15  ;;  %p579_p4 = pnand %p578_p3, %p572_p0 }
  0x15   :  { %504 = vmatprep.mubr.msk.f32.mxu0 %vm596_vm1, %v595_v2 }
  0x16   :  { %226 = vperm.xlu0 %569, %v216_v16  }
  0x17   :  { %231 = vperm.xlu1 %570, %v217_v17  }
  0x18   :  { %505 = vmatmul.mubr.msk.f32.gmra.mrb[8].mxu0 %vm79_vm0, %v34_v18 }
  0x19   :  { %507 = vmatprep.mubr.msk.f32.mxu0 %vm596_vm1, %v595_v2 }
  0x1a   :  { %236 = vperm.xlu0 %569, %v218_v19  }
  0x1b   :  { %349 = vperm.xlu1 %570, %v346_v20   ;;  %v345_v20 = vld [vmem:[%s762_s5] sm:$0x1] }
  0x1c   :  { %508 = vmatmul.mubr.msk.f32.gmra.mrb[10].mxu0 %vm79_vm0, %v35_v21  ;;  %v352_v21 = vlaneseq }
  0x1d   :  { %510 = vmatprep.mubr.msk.f32.mxu0 %vm596_vm1, %v595_v2 }
  0x20   :  { %511 = vmatmul.mubr.msk.f32.gmra.mrb[12].mxu0 %vm79_vm0, %v36_v22  ;;  %v353_v22 = vshrl.u32 %v352_v21, 7 }
  0x22   :  { %v354_v23 = vsub.s32 0, %v353_v22 }
  0x85   :  { %v47_v24 = vpop.permute.xlu0 %46 }
  0x86   :  { %v57_v32 = vpop.permute.xlu1 %56 }
  0x89   :  { %v52_v28 = vpop.permute.xlu0 %51 }
  0x8a   :  { %v62_v39 = vpop.permute.xlu1 %61 }
  0x8d   :  { %v67_v48 = vpop.permute.xlu0 %66 }
  0x8e   :  { %v72_v50 = vpop.permute.xlu1 %71 }
  0x91   :  { %v77_v56 = vpop.permute.xlu0 %76 }
  0x92   :  { %v222_v4 = vpop.permute.xlu1 %221 }
  0x95   :  { %v227_v3 = vpop.permute.xlu0 %226 }
  0x96   :  { %v232_v13 = vpop.permute.xlu1 %231 }
  0x99   :  { %v237_v10 = vpop.permute.xlu0 %236 }
  0xdb   :  { %v170_v25 = vpop.f32.mrb[0].mxu0 }
  0xdc   :  { %v494_v26 = vpop.f32.mrb[1].mxu0  ;;  %v171_v27 = vadd.f32 %v170_v25, %v47_v24  ;;  %v350_v24 = vpop.permute.xlu1 %349 }
  0xdd   :  { %v355_v25 = vrot.slane %v350_v24, %v354_v23 }
  0xde   :  { %v204_v33 = vmax.f32 %v171_v27, 0.0 }
  0xdf   :  { %v175_v29 = vpop.f32.mrb[2].mxu0 }
  0xe0   :  { %v176_v30 = vadd.f32 %v175_v29, %v52_v28  ;;  %v497_v31 = vpop.f32.mrb[3].mxu0 }
  0xe2   :  { %v205_v34 = vmax.f32 %v176_v30, 0.0 }
  0xe3   :  { %v180_v35 = vpop.f32.mrb[4].mxu0 }
  0xe4   :  { %v500_v36 = vpop.f32.mrb[5].mxu0  ;;  %v544_v37 = vpack.c.bf16 %v205_v34, %v204_v33  ;;  %v181_v38 = vadd.f32 %v180_v35, %v57_v32 }
  0xe6   :  { %545 = vmatprep.subr.bf16.mxu1 %v544_v37  ;;  %v206_v43 = vmax.f32 %v181_v38, 0.0 }
  0xe7   :  { %v185_v40 = vpop.f32.mrb[6].mxu0  ;;  %547 = vmatpush3.bf16.msra.mxu1 %v544_v37 }
  0xe8   :  { %v186_v41 = vadd.f32 %v185_v40, %v62_v39  ;;  %v503_v42 = vpop.f32.mrb[7].mxu0 }
  0xea   :  { %v207_v44 = vmax.f32 %v186_v41, 0.0 }
  0xeb   :  { %v190_v45 = vpop.f32.mrb[8].mxu0 }
  0xec   :  { %v548_v46 = vpack.c.bf16 %v207_v44, %v206_v43  ;;  %v506_v47 = vpop.f32.mrb[9].mxu0  ;;  %v191_v49 = vadd.f32 %v190_v45, %v67_v48 }
  0xee   :  { %549 = vmatprep.subr.bf16.mxu1 %v548_v46  ;;  %v208_v54 = vmax.f32 %v191_v49, 0.0 }
  0xef   :  { %v195_v51 = vpop.f32.mrb[10].mxu0  ;;  %551 = vmatpush3.bf16.msra.mxu1 %v548_v46 }
  0xf0   :  { %v196_v52 = vadd.f32 %v195_v51, %v72_v50  ;;  %v509_v53 = vpop.f32.mrb[11].mxu0 }
  0xf2   :  { %v209_v55 = vmax.f32 %v196_v52, 0.0 }
  0xf3   :  { %v200_v57 = vpop.f32.mrb[12].mxu0 }
  0xf4   :  { %v552_v58 = vpack.c.bf16 %v209_v55, %v208_v54  ;;  %v201_v59 = vadd.f32 %v200_v57, %v77_v56  ;;  %v512_v60 = vpop.f32.mrb[13].mxu0 }
  0xf6   :  { %v210_v61 = vmax.f32 %v201_v59, 0.0  ;;  %553 = vmatprep.subr.bf16.mxu1 %v552_v58 }
  0xf7   :  { %555 = vmatpush3.bf16.msra.mxu1 %v552_v58 }
  0xf8   :  { %525 = vmatprep.subr.msk.mxu1 %vm252_vm3, %v210_v61 }
  0xfb   :  { %526 = vmatpush3.msk.msra.mxu1 %vm252_vm3, %v210_v61 }
  0xfc   :  { %528 = vmatmul.mubr.msk.f32.vlgmr.msra.gmra.mrb[0].mxu1 %vm239_vm2, %v212_v62  ;;  %556 = vmatprep.subr.bf16.mxu1 %v598_v1 }
  0xfd   :  { %530 = vmatprep.mubr.msk.f32.mxu1 %vm239_vm2, %v213_v63 }
 0x100   :  { %531 = vmatmul.mubr.msk.f32.gmra.mrb[2].mxu1 %vm239_vm2, %v214_v0 }
 0x101   :  { %541 = vmatprep.mubr.msk.f32.mxu1 %vm596_vm1, %v595_v2 }
 0x1cf   :  { %v529_v5 = vpop.f32.mrb[0].mxu1 }
 0x1d0   :  { %v328_v6 = vadd.f32 %v529_v5, %v227_v3  ;;  %v322_v7 = vpop.f32.mrb[1].mxu1 }
 0x1d1   :  { %v323_v8 = vadd.f32 %v322_v7, %v222_v4 }
 0x1d2   :  { %v342_v9 = vmax.f32 %v328_v6, 0.0 }
 0x1d3   :  { %v341_v11 = vmax.f32 %v323_v8, 0.0  ;;  %v532_v12 = vpop.f32.mrb[2].mxu1 }
 0x1d4   :  { %v338_v14 = vadd.f32 %v532_v12, %v237_v10  ;;  %v332_v15 = vpop.f32.mrb[3].mxu1 }
 0x1d5   :  { %v557_v16 = vpack.c.bf16 %v342_v9, %v341_v11  ;;  %v333_v17 = vadd.f32 %v332_v15, %v232_v13 }
 0x1d6   :  { %v344_v18 = vmax.f32 %v338_v14, 0.0 }
 0x1d7   :  { %v343_v2 = vmax.f32 %v333_v17, 0.0  ;;  %558 = vmatpush3.bf16.msra.mxu1 %v557_v16 }
 0x1d8   :  { %559 = vmatprep.subr.bf16.mxu1 %v598_v1 }
 0x1d9   :  { %v560_v19 = vpack.c.bf16 %v344_v18, %v343_v2 }
 0x1db   :  { %562 = vmatpush3.bf16.msk.msra.mxu1 %vm561_vm6, %v560_v19 }
 0x1de   :  { %542 = vmatmul.mubr.msk.f32.vlgmr.msra.gmra.mrb[4].mxu1 %vm356_vm7, %v345_v20 }
 0x2b1   :  { %v430_v26 = vpop.f32.mrb[4].mxu1 }
 0x2b2   :  { %v431_v27 = vadd.f32 %v430_v26, %v355_v25  ;;  %v543_v28 = vpop.f32.mrb[5].mxu1 }
 0x2b4   :  { %v434_v29 = vmax.f32 %v431_v27, 0.0 }
 0x2b6   :  { %436 = vst.msk [vmem:[#allocation3] sm:$0x1] %vm435_vm8, %v434_v29 }
 0x2b7   :  { %582 = shalt.err (!%p579_p4)
}
 0x2b8   :  { %s583_s25 = scalar_lea.hbm %s764_s7, 16 }
 0x2b9   :  { %p584_p5 = scmp.ne.s32.totalorder %s764_s7, %s583_s25  ;;  %p587_p6 = scmp.lt.u32.totalorder %s583_s25, %s764_s7 }
 0x2bb   :  { %p589_p7 = pnand %p587_p6, %p584_p5 }
 0x2bd   :  { %592 = shalt.err (!%p589_p7)
}
 0x2be   :  { %446 = dma.vmem_to_hbm [thread:$0]  %s444_s21, 16, %s764_s7, [#allocation4]  }
 0x2bf   :  { %593 = dma.done.wait [#allocation4], 16  }
 0x2c0   :  { %594 = vsyncadd [#allocation4], 4294967280 }
 0x2c1   :  { %450 = vsyncpa [#allocation4], 1 }

</bundles_post_ra>
